<compile_context>
chip_gen: v7x
topology: tpu7x:2x2x1
jax: 0.10.0
libtpu: 0.0.40
codegen_flags: <defaults>
</compile_context>

<pallas_src>
import functools

import jax
import jax.numpy as jnp
import numpy as np
from jax import lax
from jax.experimental import pallas as pl
from jax.experimental.pallas import tpu as pltpu

NEG_SLOPE = 0.1                         # AdaptedConv negative_slope
LIN_COEF = 0.5 * (1.0 + NEG_SLOPE)      # leaky_relu(z) = LIN*z + ABS*|z|
ABS_COEF = 0.5 * (1.0 - NEG_SLOPE)
BN_EPS = 1e-5
NEG_BIG = -1e30
TILE_D = 128                            # attention dst-row tile


def _round_up(v, m):
    return (v + m - 1) // m * m


def _pick_tile(n, cands=(512, 256, 128)):
    for c in cands:
        if n % c == 0:
            return c
    raise ValueError(f"{n} is not a multiple of 128")


# ----------------------------------------------------------------------------
# Kernel 1: domain statistics  d = mean(x[central]) - mean(x[~central])
# Padding rows are zero, so plain block sums + host-known counts suffice
# (no per-row masks beyond the central indicator, no count accumulators).
# ----------------------------------------------------------------------------
def _stats_kernel(x_ref, m_ref, d_ref, s_all, s_cen, *, inv_c, inv_t):
    t = pl.program_id(0)

    @pl.when(t == 0)
    def _init():
        s_all[...] = jnp.zeros_like(s_all)
        s_cen[...] = jnp.zeros_like(s_cen)

    x = x_ref[...]                                    # [Tr, F]
    m = m_ref[...]                                    # [Tr, 1]  1.0 == central row
    s_all[...] += jnp.sum(x, axis=0, keepdims=True)
    s_cen[...] += jnp.sum(x * m, axis=0, keepdims=True)

    @pl.when(t == pl.num_programs(0) - 1)
    def _fin():
        sc = s_cen[...]
        d_ref[...] = sc * inv_c - (s_all[...] - sc) * inv_t


def domain_diff(x, m_col, n_c, n_t):
    n_pad, f = x.shape
    rt = _pick_tile(n_pad)
    kern = functools.partial(_stats_kernel,
                             inv_c=1.0 / max(n_c, 1),   # empty-domain guard
                             inv_t=1.0 / max(n_t, 1))   # (PyTorch would NaN here)
    return pl.pallas_call(
        kern,
        grid=(n_pad // rt,),
        in_specs=[pl.BlockSpec((rt, f), lambda i: (i, 0)),
                  pl.BlockSpec((rt, 1), lambda i: (i, 0))],
        out_specs=pl.BlockSpec((1, f), lambda i: (0, 0)),
        out_shape=jax.ShapeDtypeStruct((1, f), jnp.float32),
        scratch_shapes=[pltpu.VMEM((1, f), jnp.float32)] * 2,
        compiler_params=pltpu.CompilerParams(dimension_semantics=("arbitrary",)),
    )(x, m_col)


# ----------------------------------------------------------------------------
# Kernel 2: per-node gating + projections (AdaptedConv "node" part), row-tiled,
# multi-head (heads share the same input x and domain diff d).
# Per head: h_t2s = lin_s(x + g_t2s*d*(1-m)), h_s2t = lin_t(x - g_s2t*d*m),
#           p_*   = 0.55 * (h_* . a_f_*)          (rank-1 part of the GATv2 score)
# The gate matmul is fused into the main x @ [W_s|W_t|Wg_x] projection; the
# d-projections / d-gate terms are hoisted constants.  Outputs are bf16.
# ----------------------------------------------------------------------------
def _prep_kernel(x_ref, m_ref, wbig_ref, dproj_ref, dg_ref, bcat_ref, a_ref,
                 ht2s_ref, hs2t_ref, pt_ref, ps_ref, *, k, n_heads):
    x = x_ref[...]                       # [Tr, F] f32
    m = m_ref[...]                       # [Tr, 1]
    xb = x.astype(jnp.bfloat16)
    proj = jnp.dot(xb, wbig_ref[...], preferred_element_type=jnp.float32)
    dproj = dproj_ref[...]               # [1, H*2K]  per head [d@W_s | d@W_t]
    dg = dg_ref[...]                     # [1, 2H]    per head d@Wg_d  (s2t, t2s)
    bc = bcat_ref[...]                   # [1, H*2K]  per head [b_s | b_t]
    a = a_ref[...]                       # [2H, K]    rows (a_t2s, a_s2t) per head
    omm = 1.0 - m

    ht_parts, hs_parts, pt_parts, ps_parts = [], [], [], []
    for h in range(n_heads):
        po = h * (2 * k + 2)
        co = h * 2 * k
        base_s = proj[:, po:po + k]
        base_t = proj[:, po + k:po + 2 * k]
        g = jnp.tanh(proj[:, po + 2 * k:po + 2 * k + 2] + dg[:, 2 * h:2 * h + 2])
        g_s2t = g[:, 0:1]
        g_t2s = g[:, 1:2]
        h_t2s = base_s + (g_t2s * omm) * dproj[:, co:co + k] + bc[:, co:co + k]
        h_s2t = base_t - (g_s2t * m) * dproj[:, co + k:co + 2 * k] + bc[:, co + k:co + 2 * k]
        pt_parts.append(LIN_COEF * jnp.sum(h_t2s * a[2 * h:2 * h + 1, :],
                                           axis=1, keepdims=True))
        ps_parts.append(LIN_COEF * jnp.sum(h_s2t * a[2 * h + 1:2 * h + 2, :],
                                           axis=1, keepdims=True))
        ht_parts.append(h_t2s)
        hs_parts.append(h_s2t)

    def _cat(parts):
        return parts[0] if len(parts) == 1 else jnp.concatenate(parts, axis=1)

    ht2s_ref[...] = _cat(ht_parts).astype(jnp.bfloat16)
    hs2t_ref[...] = _cat(hs_parts).astype(jnp.bfloat16)
    pt_ref[...] = _cat(pt_parts)
    ps_ref[...] = _cat(ps_parts)


def adapted_prep(x, m_col, d, heads):
    """heads: list of AdaptedConv parameter dicts sharing input x / domain-diff d."""
    n_pad, f = x.shape
    k = heads[0]["out_dim"]
    nh = len(heads)
    rt = _pick_tile(n_pad)

    # hoisted, grid-invariant constants (review: no per-tile M=1 matmuls / casts)
    wbig = jnp.concatenate(
        [jnp.concatenate([p["w_s"], p["w_t"], p["wg_x"]], axis=1) for p in heads],
        axis=1).astype(jnp.bfloat16)                                  # [F, nh*(2K+2)]
    dproj = jnp.concatenate(
        [jnp.concatenate([d @ p["w_s"], d @ p["w_t"]], axis=1) for p in heads], axis=1)
    dg = jnp.concatenate([d @ p["wg_d"] for p in heads], axis=1)      # [1, 2*nh]
    bcat = jnp.concatenate(
        [jnp.concatenate([p["b_s"], p["b_t"]], axis=1) for p in heads], axis=1)
    a_all = jnp.concatenate(
        [jnp.concatenate([p["a_t2s"], p["a_s2t"]], axis=0) for p in heads], axis=0)

    wproj = nh * (2 * k + 2)
    kern = functools.partial(_prep_kernel, k=k, n_heads=nh)
    return pl.pallas_call(
        kern,
        grid=(n_pad // rt,),
        in_specs=[pl.BlockSpec((rt, f), lambda i: (i, 0)),
                  pl.BlockSpec((rt, 1), lambda i: (i, 0)),
                  pl.BlockSpec((f, wproj), lambda i: (0, 0)),
                  pl.BlockSpec((1, nh * 2 * k), lambda i: (0, 0)),
                  pl.BlockSpec((1, nh * 2), lambda i: (0, 0)),
                  pl.BlockSpec((1, nh * 2 * k), lambda i: (0, 0)),
                  pl.BlockSpec((2 * nh, k), lambda i: (0, 0))],
        out_specs=(pl.BlockSpec((rt, nh * k), lambda i: (i, 0)),
                   pl.BlockSpec((rt, nh * k), lambda i: (i, 0)),
                   pl.BlockSpec((rt, nh), lambda i: (i, 0)),
                   pl.BlockSpec((rt, nh), lambda i: (i, 0))),
        out_shape=(jax.ShapeDtypeStruct((n_pad, nh * k), jnp.bfloat16),
                   jax.ShapeDtypeStruct((n_pad, nh * k), jnp.bfloat16),
                   jax.ShapeDtypeStruct((n_pad, nh), jnp.float32),
                   jax.ShapeDtypeStruct((n_pad, nh), jnp.float32)),
        compiler_params=pltpu.CompilerParams(dimension_semantics=("parallel",)),
    )(x, m_col, wbig, dproj, dg, bcat, a_all)


# ----------------------------------------------------------------------------
# Kernel 3: GATv2-style attention with flash-style src tiling + online softmax.
# One call handles one domain's dst rows (tiles are domain-homogeneous, so there
# are no per-row selects): score[d,s] = p[d] + p[s] + sum_k (0.45 a_k)|h_dk+h_sk|,
# masked row softmax (streamed), aggregation  out[d] = softmax . h[src].
# n_heads independent heads share the adjacency stream (classifier fusion).
# ----------------------------------------------------------------------------
def _attn_kernel(adj_ref, hdst_ref, hsT_ref, hs_ref, pd_ref, psT_ref, a_ref,
                 out_ref, m_sc, l_sc, acc_sc, *, k, n_heads, apply_relu,
                 log_softmax):
    s_idx = pl.program_id(1)

    @pl.when(s_idx == 0)
    def _init():
        m_sc[...] = jnp.full_like(m_sc, NEG_BIG)
        l_sc[...] = jnp.zeros_like(l_sc)
        acc_sc[...] = jnp.zeros_like(acc_sc)

    # adjacency streamed as int8; widening compare kept on the proven lowering path
    invalid = adj_ref[...].astype(jnp.float32) == 0.0       # [Td, Ts]
    hdst = hdst_ref[...].astype(jnp.float32)                # [Td, nH*K] (bf16 stream)
    hsT = hsT_ref[...].astype(jnp.float32)                  # [nH*K, Ts]
    hs_b = hs_ref[...]                                      # [Ts, nH*K] bf16 (MXU RHS)
    a = a_ref[...]                                          # [nH, K]  (pre-scaled 0.45)
    pd = pd_ref[...]                                        # [Td, nH]
    psT = psT_ref[...]                                      # [nH, Ts]

    for h in range(n_heads):
        off = h * k
        # rank-1 linear part of the split leaky_relu score
        score = pd[:, h:h + 1] + psT[h:h + 1, :]            # [Td, Ts]
        # abs part: 4 VPU ops per element per k (add, abs, mul, add)
        for kk in range(k):
            z = hdst[:, off + kk:off + kk + 1] + hsT[off + kk:off + kk + 1, :]
            score = score + a[h:h + 1, kk:kk + 1] * jnp.abs(z)
        score = jnp.where(invalid, NEG_BIG, score)

        # online softmax update
        m_prev = m_sc[h]                                    # [Td, 1]
        m_new = jnp.maximum(m_prev, jnp.max(score, axis=1, keepdims=True))
        alpha = jnp.exp(m_prev - m_new)
        p = jnp.exp(score - m_new)
        l_sc[h] = alpha * l_sc[h] + jnp.sum(p, axis=1, keepdims=True)
        acc_sc[h] = alpha * acc_sc[h] + jnp.dot(
            p.astype(jnp.bfloat16), hs_b[:, off:off + k],
            preferred_element_type=jnp.float32)
        m_sc[h] = m_new

    @pl.when(s_idx == pl.num_programs(1) - 1)
    def _fin():
        outs = []
        for h in range(n_heads):
            # exact per-row reciprocal ([Td,1] only) -> log_softmax not perturbed
            o = acc_sc[h] * (1.0 / l_sc[h])
            if apply_relu:
                o = jnp.maximum(o, 0.0)
            if log_softmax:
                mx = jnp.max(o, axis=1, keepdims=True)
                o = o - (mx + jnp.log(jnp.sum(jnp.exp(o - mx), axis=1, keepdims=True)))
            outs.append(o)
        out_ref[...] = outs[0] if n_heads == 1 else jnp.concatenate(outs, axis=1)


def adapted_attention(adj8, ht2s, hs2t, p_t2s, p_s2t, a_t2s, a_s2t, nc_pad, *,
                      out_dim, n_heads, apply_relu, log_softmax):
    n_pad = adj8.shape[0]
    w = n_heads * out_dim
    td = TILE_D
    ts = _pick_tile(n_pad)
    kern = functools.partial(_attn_kernel, k=out_dim, n_heads=n_heads,
                             apply_relu=apply_relu, log_softmax=log_softmax)

    def one_domain(adj_rows, hdst, hsrc_t, hsrc, pdst, psrc_t, a_rows):
        nd = adj_rows.shape[0]
        return pl.pallas_call(
            kern,
            grid=(nd // td, n_pad // ts),
            in_specs=[pl.BlockSpec((td, ts), lambda d, s: (d, s)),            # adj
                      pl.BlockSpec((td, w), lambda d, s: (d, 0)),             # dst feats
                      pl.BlockSpec((w, ts), lambda d, s: (0, s)),             # src feats^T
                      pl.BlockSpec((ts, w), lambda d, s: (s, 0)),             # agg RHS
                      pl.BlockSpec((td, n_heads), lambda d, s: (d, 0)),       # p[dst]
                      pl.BlockSpec((n_heads, ts), lambda d, s: (0, s)),       # p[src]^T
                      pl.BlockSpec((n_heads, out_dim), lambda d, s: (0, 0))], # 0.45*a
            out_specs=pl.BlockSpec((td, w), lambda d, s: (d, 0)),
            out_shape=jax.ShapeDtypeStruct((nd, w), jnp.float32),
            scratch_shapes=[pltpu.VMEM((n_heads, td, 1), jnp.float32),        # running max
                            pltpu.VMEM((n_heads, td, 1), jnp.float32),        # running denom
                            pltpu.VMEM((n_heads, td, out_dim), jnp.float32)], # accumulator
            compiler_params=pltpu.CompilerParams(
                dimension_semantics=("parallel", "arbitrary"),
                vmem_limit_bytes=32 * 1024 * 1024),
        )(adj_rows, hdst, hsrc_t, hsrc, pdst, psrc_t, a_rows)

    a_c = (ABS_COEF * a_t2s).astype(jnp.float32)
    a_t = (ABS_COEF * a_s2t).astype(jnp.float32)
    # central dst rows use the t2s projection / a_f_t2s; target dst rows use s2t.
    out_c = one_domain(adj8[:nc_pad], ht2s[:nc_pad], ht2s.T, ht2s,
                       p_t2s[:nc_pad], p_t2s.T, a_c)
    out_t = one_domain(adj8[nc_pad:], hs2t[nc_pad:], hs2t.T, hs2t,
                       p_s2t[nc_pad:], p_s2t.T, a_t)
    return jnp.concatenate([out_c, out_t], axis=0)


# ----------------------------------------------------------------------------
# Kernel 4: clf_transformer MLP  Linear -> BatchNorm(eval, folded) -> ReLU -> Linear
# ----------------------------------------------------------------------------
def _mlp_kernel(x_ref, w1_ref, b1_ref, w2_ref, b2_ref, o_ref):
    y = jnp.dot(x_ref[...].astype(jnp.bfloat16), w1_ref[...],
                preferred_element_type=jnp.float32) + b1_ref[...]
    y = jnp.maximum(y, 0.0)
    o_ref[...] = (jnp.dot(y.astype(jnp.bfloat16), w2_ref[...],
                          preferred_element_type=jnp.float32) + b2_ref[...])


def mlp_transform(x, p):
    n_pad, hdim = x.shape
    out_dim = p["w2"].shape[1]
    rt = _pick_tile(n_pad)
    # fold eval-mode BatchNorm into the first Linear; pre-cast weights to bf16
    s = p["gamma"] * lax.rsqrt(p["running_var"] + BN_EPS)
    w1f = (p["w1"] * s).astype(jnp.bfloat16)
    b1f = (p["b1"] - p["running_mean"]) * s + p["beta"]
    w2b = p["w2"].astype(jnp.bfloat16)
    return pl.pallas_call(
        _mlp_kernel,
        grid=(n_pad // rt,),
        in_specs=[pl.BlockSpec((rt, hdim), lambda i: (i, 0)),
                  pl.BlockSpec((hdim, hdim), lambda i: (0, 0)),
                  pl.BlockSpec((1, hdim), lambda i: (0, 0)),
                  pl.BlockSpec((hdim, out_dim), lambda i: (0, 0)),
                  pl.BlockSpec((1, out_dim), lambda i: (0, 0))],
        out_specs=pl.BlockSpec((rt, out_dim), lambda i: (i, 0)),
        out_shape=jax.ShapeDtypeStruct((n_pad, out_dim), jnp.float32),
        compiler_params=pltpu.CompilerParams(dimension_semantics=("parallel",)),
    )(x, w1f, b1f, w2b, p["b2"])


# ----------------------------------------------------------------------------
# full KTGNN_no_complement forward (layer_num=2, use_bn=False, root_weight=False,
# need_complement=False, eval mode)
# ----------------------------------------------------------------------------
def ktgnn_forward(x, central_mask, adj, params):
    n, _ = x.shape

    # ---- host-side domain partition + padding (analogue of the module's cached
    #      graph_partition preprocessing; must run outside jit, like PyG's).
    cm = np.asarray(central_mask).astype(bool)
    idx_c = np.nonzero(cm)[0]
    idx_t = np.nonzero(~cm)[0]
    n_c, n_t = int(idx_c.shape[0]), int(idx_t.shape[0])
    assert n_c > 0 and n_t > 0, "both domains must be non-empty (PyTorch would NaN)"

    nc_pad = _round_up(n_c, TILE_D)
    nt_pad = _round_up(n_t, TILE_D)
    n_pad = nc_pad + nt_pad

    gather_np = np.zeros((n_pad,), np.int32)
    gather_np[:n_c] = idx_c
    gather_np[nc_pad:nc_pad + n_t] = idx_t
    valid_np = np.zeros((n_pad, 1), np.float32)
    valid_np[:n_c] = 1.0
    valid_np[nc_pad:nc_pad + n_t] = 1.0
    m_np = np.zeros((n_pad, 1), np.float32)
    m_np[:n_c] = 1.0

    gather = jnp.asarray(gather_np)
    valid = jnp.asarray(valid_np)
    m_col = jnp.asarray(m_np)

    xs = x.astype(jnp.float32)[gather] * valid
    adj8 = (adj.astype(jnp.float32)[gather][:, gather]
            * valid * valid.reshape(1, n_pad)).astype(jnp.int8)

    # ---- layer 0: AdaptedConv(dim_share -> hidden) + ReLU (dropout=identity, eval)
    p0 = params["conv0"]
    d0 = domain_diff(xs, m_col, n_c, n_t)
    ht0, hs0, pt0, ps0 = adapted_prep(xs, m_col, d0, [p0])
    h = adapted_attention(adj8, ht0, hs0, pt0, ps0, p0["a_t2s"], p0["a_s2t"],
                          nc_pad, out_dim=p0["out_dim"], n_heads=1,
                          apply_relu=True, log_softmax=False)
    h = h * valid                       # zero padded rows (keeps domain stats exact)

    # ---- clf_transformer branch
    h_t = mlp_transform(h, params["clf_transformer"]) * valid

    # ---- fused classifier heads: clf_base(h), clf_target(h), clf_target(h_t)
    pb_prm, pt_prm = params["clf_base"], params["clf_target"]
    c = pb_prm["out_dim"]
    hidden = h.shape[1]

    d_cat = domain_diff(jnp.concatenate([h, h_t], axis=1), m_col, n_c, n_t)
    d_h, d_ht = d_cat[:, :hidden], d_cat[:, hidden:]

    hbt, hbs, pbt, pbs = adapted_prep(h, m_col, d_h, [pb_prm, pt_prm])   # 2 heads
    hxt, hxs, pxt, pxs = adapted_prep(h_t, m_col, d_ht, [pt_prm])        # 1 head

    ht2s_all = jnp.concatenate([hbt, hxt], axis=1)          # [N_pad, 3*C] bf16
    hs2t_all = jnp.concatenate([hbs, hxs], axis=1)
    pt_all = jnp.concatenate([pbt, pxt], axis=1)            # [N_pad, 3]
    ps_all = jnp.concatenate([pbs, pxs], axis=1)
    a_t2s_all = jnp.concatenate([pb_prm["a_t2s"], pt_prm["a_t2s"], pt_prm["a_t2s"]], axis=0)
    a_s2t_all = jnp.concatenate([pb_prm["a_s2t"], pt_prm["a_s2t"], pt_prm["a_s2t"]], axis=0)

    logp = adapted_attention(adj8, ht2s_all, hs2t_all, pt_all, ps_all,
                             a_t2s_all, a_s2t_all, nc_pad, out_dim=c, n_heads=3,
                             apply_relu=False, log_softmax=True)

    # ---- un-permute back to the original node order
    out = jnp.zeros((n, 3 * c), jnp.float32)
    out = out.at[idx_c].set(logp[:n_c]).at[idx_t].set(logp[nc_pad:nc_pad + n_t])
    return (out[:, 0:c],            # log_softmax(logits_base)
            out[:, c:2 * c],        # log_softmax(logits_target)
            out[:, 2 * c:3 * c],    # log_softmax(logits_transformed_target)
            None)                   # loss_dist is None when need_complement=False


# ----------------------------------------------------------------------------
# deterministic synthetic parameters
# ----------------------------------------------------------------------------
def _init(key, shape, scale=0.1):
    return scale * jax.random.normal(key, shape, jnp.float32)


def init_adapted_conv(key, in_dim, out_dim):
    ks = jax.random.split(key, 8)
    return dict(
        w_s=_init(ks[0], (in_dim, out_dim)),          # lin_s weight (pre-transposed)
        w_t=_init(ks[1], (in_dim, out_dim)),          # lin_t weight
        b_s=_init(ks[2], (1, out_dim)),
        b_t=_init(ks[3], (1, out_dim)),
        wg_x=_init(ks[4], (in_dim, 2)),               # a_g_* x-part; cols [s2t, t2s]
        wg_d=_init(ks[5], (in_dim, 2)),               # a_g_* domain_diff part
        a_t2s=_init(ks[6], (1, out_dim)),             # a_f_t2s (central dst)
        a_s2t=_init(ks[7], (1, out_dim)),             # a_f_s2t
        out_dim=out_dim,
    )


def init_transformer(key, hidden, hidden_target):
    ks = jax.random.split(key, 4)
    return dict(
        w1=_init(ks[0], (hidden, hidden)),
        b1=_init(ks[1], (1, hidden)),
        gamma=jnp.ones((1, hidden), jnp.float32),
        beta=jnp.zeros((1, hidden), jnp.float32),
        running_mean=jnp.zeros((1, hidden), jnp.float32),
        running_var=jnp.ones((1, hidden), jnp.float32),
        w2=_init(ks[2], (hidden, hidden_target)),
        b2=_init(ks[3], (1, hidden_target)),
    )


# ----------------------------------------------------------------------------
if __name__ == "__main__":
    key = jax.random.PRNGKey(0)
    N, F_IN, HIDDEN, NUM_CLASSES = 256, 64, 64, 2     # small synthetic shapes

    k_x, k_e, k_p = jax.random.split(key, 3)

    # node features [N, dim_share] and central_mask (both domains non-empty)
    x = jax.random.normal(k_x, (N, F_IN), jnp.float32)
    central_mask = jnp.arange(N) < (N // 2)

    # random edge_index -> dense adjacency adj[dst, src];
    # graph_partition: remove self loops then add self loops == force diag=1
    E = 4096
    ks_, kd_ = jax.random.split(k_e)
    src = jax.random.randint(ks_, (E,), 0, N)
    dst = jax.random.randint(kd_, (E,), 0, N)
    adj = jnp.zeros((N, N), jnp.float32).at[dst, src].set(1.0)
    eye = jnp.eye(N, dtype=jnp.float32)
    adj = adj * (1.0 - eye) + eye

    kc0, kb, kt, ktr = jax.random.split(k_p, 4)
    params = dict(
        conv0=init_adapted_conv(kc0, F_IN, HIDDEN),
        clf_base=init_adapted_conv(kb, HIDDEN, NUM_CLASSES),
        clf_target=init_adapted_conv(kt, HIDDEN, NUM_CLASSES),
        clf_transformer=init_transformer(ktr, HIDDEN, HIDDEN),
    )

    out = ktgnn_forward(x, central_mask, adj, params)
    out = jax.block_until_ready(out)

    assert out[0].shape == (N, NUM_CLASSES)
    assert out[1].shape == (N, NUM_CLASSES)
    assert out[2].shape == (N, NUM_CLASSES)
    assert out[3] is None
    assert bool(jnp.all(jnp.isfinite(out[0])))
    assert bool(jnp.all(jnp.isfinite(out[1])))
    assert bool(jnp.all(jnp.isfinite(out[2])))
    print("KERNEL_OK")
</pallas_src>

<mosaic_0001>
module attributes {stable_mosaic.version = 11 : i64} {
  func.func @_stats_kernel(%arg0: i32, %arg1: memref<256x64xf32, #tpu.memory_space<vmem>>, %arg2: memref<256x1xf32, #tpu.memory_space<vmem>>, %arg3: memref<1x64xf32, #tpu.memory_space<vmem>>, %arg4: memref<1x64xf32, #tpu.memory_space<vmem>>, %arg5: memref<1x64xf32, #tpu.memory_space<vmem>>) attributes {dimension_semantics = [#tpu.dimension_semantics<arbitrary>], iteration_bounds = array<i64: 1>, scalar_prefetch = 0 : i64, scratch_operands = 2 : i64, tpu.core_type = #tpu.core_type<tc>, window_params = [{transform_indices = @transform_0, window_bounds = array<i64: 256, 64>}, {transform_indices = @transform_1, window_bounds = array<i64: 256, 1>}, {pipeline_mode = #tpu.pipeline_mode<synchronous>, transform_indices = @transform_2, window_bounds = array<i64: 1, 64>}]} {
    %c0_i32 = arith.constant 0 : i32
    %0 = arith.cmpi eq, %arg0, %c0_i32 : i32
    %1 = arith.extui %0 : i1 to i32
    %c0_i32_0 = arith.constant 0 : i32
    %2 = arith.cmpi ne, %1, %c0_i32_0 : i32
    scf.if %2 {
      %cst_15 = arith.constant 0.000000e+00 : f32
      %20 = vector.broadcast %cst_15 : f32 to vector<1x64xf32>
      %c0_16 = arith.constant 0 : index
      %c0_17 = arith.constant 0 : index
      %21 = vector.load %arg4[%c0_16, %c0_17] : memref<1x64xf32, #tpu.memory_space<vmem>>, vector<1x64xf32>
      tpu.vector_store %arg4[%c0_16, %c0_17], %20 {strides = array<i32>} : memref<1x64xf32, #tpu.memory_space<vmem>>, vector<1x64xf32>,
      %cst_18 = arith.constant 0.000000e+00 : f32
      %22 = vector.broadcast %cst_18 : f32 to vector<1x64xf32>
      %c0_19 = arith.constant 0 : index
      %c0_20 = arith.constant 0 : index
      %23 = vector.load %arg5[%c0_19, %c0_20] : memref<1x64xf32, #tpu.memory_space<vmem>>, vector<1x64xf32>
      tpu.vector_store %arg5[%c0_19, %c0_20], %22 {strides = array<i32>} : memref<1x64xf32, #tpu.memory_space<vmem>>, vector<1x64xf32>,
    } else {
    }
    %c0 = arith.constant 0 : index
    %c0_1 = arith.constant 0 : index
    %3 = vector.load %arg1[%c0, %c0_1] : memref<256x64xf32, #tpu.memory_space<vmem>>, vector<256x64xf32>
    %c0_2 = arith.constant 0 : index
    %c0_3 = arith.constant 0 : index
    %4 = vector.load %arg2[%c0_2, %c0_3] : memref<256x1xf32, #tpu.memory_space<vmem>>, vector<256x1xf32>
    %c0_4 = arith.constant 0 : index
    %c0_5 = arith.constant 0 : index
    %5 = vector.load %arg4[%c0_4, %c0_5] : memref<1x64xf32, #tpu.memory_space<vmem>>, vector<1x64xf32>
    %cst = arith.constant dense<0.000000e+00> : vector<64xf32>
    %6 = vector.multi_reduction <add>, %3, %cst [0] : vector<256x64xf32> to vector<64xf32>
    %7 = vector.shape_cast %6 : vector<64xf32> to vector<1x64xf32>
    %8 = arith.addf %5, %7 : vector<1x64xf32>
    %c0_6 = arith.constant 0 : index
    %c0_7 = arith.constant 0 : index
    %9 = vector.load %arg4[%c0_6, %c0_7] : memref<1x64xf32, #tpu.memory_space<vmem>>, vector<1x64xf32>
    tpu.vector_store %arg4[%c0_6, %c0_7], %8 {strides = array<i32>} : memref<1x64xf32, #tpu.memory_space<vmem>>, vector<1x64xf32>,
    %c0_8 = arith.constant 0 : index
    %c0_9 = arith.constant 0 : index
    %10 = vector.load %arg5[%c0_8, %c0_9] : memref<1x64xf32, #tpu.memory_space<vmem>>, vector<1x64xf32>
    %11 = vector.broadcast %4 : vector<256x1xf32> to vector<256x64xf32>
    %12 = arith.mulf %3, %11 : vector<256x64xf32>
    %cst_10 = arith.constant dense<0.000000e+00> : vector<64xf32>
    %13 = vector.multi_reduction <add>, %12, %cst_10 [0] : vector<256x64xf32> to vector<64xf32>
    %14 = vector.shape_cast %13 : vector<64xf32> to vector<1x64xf32>
    %15 = arith.addf %10, %14 : vector<1x64xf32>
    %c0_11 = arith.constant 0 : index
    %c0_12 = arith.constant 0 : index
    %16 = vector.load %arg5[%c0_11, %c0_12] : memref<1x64xf32, #tpu.memory_space<vmem>>, vector<1x64xf32>
    tpu.vector_store %arg5[%c0_11, %c0_12], %15 {strides = array<i32>} : memref<1x64xf32, #tpu.memory_space<vmem>>, vector<1x64xf32>,
    %c0_i32_13 = arith.constant 0 : i32
    %17 = arith.cmpi eq, %arg0, %c0_i32_13 : i32
    %18 = arith.extui %17 : i1 to i32
    %c0_i32_14 = arith.constant 0 : i32
    %19 = arith.cmpi ne, %18, %c0_i32_14 : i32
    scf.if %19 {
      %c0_15 = arith.constant 0 : index
      %c0_16 = arith.constant 0 : index
      %20 = vector.load %arg5[%c0_15, %c0_16] : memref<1x64xf32, #tpu.memory_space<vmem>>, vector<1x64xf32>
      %cst_17 = arith.constant 7.812500e-03 : f32
      %21 = vector.broadcast %cst_17 : f32 to vector<1x64xf32>
      %22 = arith.mulf %20, %21 : vector<1x64xf32>
      %c0_18 = arith.constant 0 : index
      %c0_19 = arith.constant 0 : index
      %23 = vector.load %arg4[%c0_18, %c0_19] : memref<1x64xf32, #tpu.memory_space<vmem>>, vector<1x64xf32>
      %24 = arith.subf %23, %20 : vector<1x64xf32>
      %cst_20 = arith.constant 7.812500e-03 : f32
      %25 = vector.broadcast %cst_20 : f32 to vector<1x64xf32>
      %26 = arith.mulf %24, %25 : vector<1x64xf32>
      %27 = arith.subf %22, %26 : vector<1x64xf32>
      %c0_21 = arith.constant 0 : index
      %c0_22 = arith.constant 0 : index
      %28 = vector.load %arg3[%c0_21, %c0_22] : memref<1x64xf32, #tpu.memory_space<vmem>>, vector<1x64xf32>
      tpu.vector_store %arg3[%c0_21, %c0_22], %27 {strides = array<i32>} : memref<1x64xf32, #tpu.memory_space<vmem>>, vector<1x64xf32>,
    } else {
    }
    return
  }
  func.func @transform_0(%arg0: i32) -> (i32, i32) {
    %c0_i32 = arith.constant 0 : i32
    %c0_i32_0 = arith.constant 0 : i32
    return %arg0, %c0_i32 : i32, i32
  }
  func.func @transform_1(%arg0: i32) -> (i32, i32) {
    %c0_i32 = arith.constant 0 : i32
    %c0_i32_0 = arith.constant 0 : i32
    return %arg0, %c0_i32 : i32, i32
  }
  func.func @transform_2(%arg0: i32) -> (i32, i32) {
    %c0_i32 = arith.constant 0 : i32
    %c0_i32_0 = arith.constant 0 : i32
    %c0_i32_1 = arith.constant 0 : i32
    return %c0_i32, %c0_i32_0 : i32, i32
  }
}

</mosaic_0001>

<bundles_post_ra>
// kernel: tpu_custom_call.1
= control target key start
LH: loop header
LB: loop body
LE: loop exit
PB: predicated region body
PF: predicated region fallthrough
CT: control target
= control target key end

     0   :  { %v474_v2 = vmov 0   ;;  %vm84_vm0 = vcmask 523264   ;;  %s893_s0 = inlined_call_operand.vmem [shape: f32[256,64], index: 0, kind: input, shape index: {}]   ;;  %s894_s1 = inlined_call_operand.vmem [shape: f32[256,1], index: 1, kind: input, shape index: {}]   ;;  %s895_s2 = inlined_call_operand.hbm [shape: f32[1,64], index: 2, kind: output, shape index: {}]  }
   0x1   :  { %v53_v0 = vld [vmem:[%s894_s1 + $0x10] sm:$0xff]  ;;  %v51_v1 = vld [vmem:[%s894_s1] sm:$0xff]  ;;  %449 = vset.pattern.permute.xlu1 %v474_v2  ;;  %448 = vset.pattern.permute.xlu0 %v474_v2  ;;  %v54_v3 = vld [vmem:[%s894_s1 + $0x18] sm:$0xff] }
   0x2   :  { %170 = vperm.xlu1 %449, %v53_v0   ;;  %160 = vperm.xlu0 %448, %v51_v1   ;;  %v52_v4 = vld [vmem:[%s894_s1 + $0x8] sm:$0xff]  ;;  %v55_v6 = vld [vmem:[%s894_s1 + $0x20] sm:$0xff]  ;;  %v58_v7 = vld [vmem:[%s894_s1 + $0x38] sm:$0xff] }
   0x3   :  { %v56_v5 = vld [vmem:[%s894_s1 + $0x28] sm:$0xff]  ;;  %v57_v8 = vld [vmem:[%s894_s1 + $0x30] sm:$0xff]  ;;  %v524_v10 = vld [vmem:[%s893_s0] sm:$0xff] }
   0x4   :  { %v519_v9 = vld [vmem:[%s893_s0 + $0x10] sm:$0xff]  ;;  %v529_v11 = vld [vmem:[%s893_s0 + $0x8] sm:$0xff]  ;;  %v85_v13 = vsel %vm84_vm0, %v524_v10, 0.0  ;;  %v540_v15 = vld [vmem:[%s893_s0 + $0x18] sm:$0xff] }
   0x5   :  { %v88_v12 = vsel %vm84_vm0, %v519_v9, 0.0  ;;  %v86_v14 = vsel %vm84_vm0, %v529_v11, 0.0 }
   0x6   :  { %175 = vperm.xlu1 %449, %v54_v3   ;;  %165 = vperm.xlu0 %448, %v52_v4   ;;  %v87_v16 = vadd.f32 %v86_v14, %v85_v13 }
   0xa   :  { %185 = vperm.xlu1 %449, %v56_v5   ;;  %180 = vperm.xlu0 %448, %v55_v6  }
   0xb   :  { %7 = vsyncpa [#allocation5], 0  ;;  %v90_v17 = vsel %vm84_vm0, %v540_v15, 0.0  ;;  %v60_v18 = vld [vmem:[%s894_s1 + $0x48] sm:$0xff]  ;;  %v59_v19 = vld [vmem:[%s894_s1 + $0x40] sm:$0xff]  ;;  %v89_v20 = vadd.f32 %v88_v12, %v87_v16  ;;  %vm16_vm1 = vcmask 516096  }
   0xc   :  { %v553_v21 = vld [vmem:[%s893_s0 + $0x20] sm:$0xff]  ;;  %v560_v23 = vld [vmem:[%s893_s0 + $0x28] sm:$0xff]  ;;  %v62_v26 = vld [vmem:[%s894_s1 + $0x58] sm:$0xff] }
   0xd   :  { %v92_v22 = vsel %vm84_vm0, %v553_v21, 0.0  ;;  %v91_v24 = vadd.f32 %v90_v17, %v89_v20  ;;  %v94_v25 = vsel %vm84_vm0, %v560_v23, 0.0  ;;  %v61_v27 = vld [vmem:[%s894_s1 + $0x50] sm:$0xff]  ;;  %v580_v31 = vld [vmem:[%s893_s0 + $0x38] sm:$0xff]  ;;  %v64_v34 = vld [vmem:[%s894_s1 + $0x68] sm:$0xff] }
   0xe   :  { %195 = vperm.xlu1 %449, %v58_v7   ;;  %190 = vperm.xlu0 %448, %v57_v8   ;;  %v573_v29 = vld [vmem:[%s893_s0 + $0x30] sm:$0xff]  ;;  %v98_v33 = vsel %vm84_vm0, %v580_v31, 0.0  ;;  %v63_v35 = vld [vmem:[%s894_s1 + $0x60] sm:$0xff]  ;;  %v600_v39 = vld [vmem:[%s893_s0 + $0x48] sm:$0xff] }
   0xf   :  { %v93_v28 = vadd.f32 %v92_v22, %v91_v24  ;;  %v96_v30 = vsel %vm84_vm0, %v573_v29, 0.0  ;;  %v593_v37 = vld [vmem:[%s893_s0 + $0x40] sm:$0xff]  ;;  %v102_v41 = vsel %vm84_vm0, %v600_v39, 0.0  ;;  %v66_v42 = vld [vmem:[%s894_s1 + $0x78] sm:$0xff]  ;;  %v65_v43 = vld [vmem:[%s894_s1 + $0x70] sm:$0xff] }
  0x10   :  { %v100_v38 = vsel %vm84_vm0, %v593_v37, 0.0  ;;  %v613_v45 = vld [vmem:[%s893_s0 + $0x50] sm:$0xff]  ;;  %v620_v47 = vld [vmem:[%s893_s0 + $0x58] sm:$0xff]  ;;  %v68_v50 = vld [vmem:[%s894_s1 + $0x88] sm:$0xff] }
  0x11   :  { %v95_v32 = vadd.f32 %v94_v25, %v93_v28  ;;  %v104_v46 = vsel %vm84_vm0, %v613_v45, 0.0  ;;  %v106_v49 = vsel %vm84_vm0, %v620_v47, 0.0  ;;  %v67_v51 = vld [vmem:[%s894_s1 + $0x80] sm:$0xff]  ;;  %v640_v55 = vld [vmem:[%s893_s0 + $0x68] sm:$0xff]  ;;  %v70_v58 = vld [vmem:[%s894_s1 + $0x98] sm:$0xff] }
  0x12   :  { %205 = vperm.xlu1 %449, %v60_v18   ;;  %200 = vperm.xlu0 %448, %v59_v19   ;;  %v633_v53 = vld [vmem:[%s893_s0 + $0x60] sm:$0xff]  ;;  %v110_v57 = vsel %vm84_vm0, %v640_v55, 0.0  ;;  %v69_v59 = vld [vmem:[%s894_s1 + $0x90] sm:$0xff]  ;;  %v660_v63 = vld [vmem:[%s893_s0 + $0x78] sm:$0xff] }
  0x13   :  { %v97_v36 = vadd.f32 %v96_v30, %v95_v32  ;;  %v108_v54 = vsel %vm84_vm0, %v633_v53, 0.0  ;;  %v653_v61 = vld [vmem:[%s893_s0 + $0x70] sm:$0xff]  ;;  %v114_v1 = vsel %vm84_vm0, %v660_v63, 0.0  ;;  %v72_v2 = vld [vmem:[%s894_s1 + $0xa8] sm:$0xff]  ;;  %v71_v3 = vld [vmem:[%s894_s1 + $0xa0] sm:$0xff] }
  0x14   :  { %v112_v62 = vsel %vm84_vm0, %v653_v61, 0.0  ;;  %v673_v5 = vld [vmem:[%s893_s0 + $0x80] sm:$0xff]  ;;  %v680_v7 = vld [vmem:[%s893_s0 + $0x88] sm:$0xff]  ;;  %v74_v13 = vld [vmem:[%s894_s1 + $0xb8] sm:$0xff] }
  0x15   :  { %v99_v40 = vadd.f32 %v98_v33, %v97_v36  ;;  %v116_v6 = vsel %vm84_vm0, %v673_v5, 0.0  ;;  %v118_v12 = vsel %vm84_vm0, %v680_v7, 0.0  ;;  %v73_v14 = vld [vmem:[%s894_s1 + $0xb0] sm:$0xff]  ;;  %v700_v19 = vld [vmem:[%s893_s0 + $0x98] sm:$0xff]  ;;  %v76_v24 = vld [vmem:[%s894_s1 + $0xc8] sm:$0xff] }
  0x16   :  { %215 = vperm.xlu1 %449, %v62_v26   ;;  %210 = vperm.xlu0 %448, %v61_v27   ;;  %v693_v17 = vld [vmem:[%s893_s0 + $0x90] sm:$0xff]  ;;  %v122_v22 = vsel %vm84_vm0, %v700_v19, 0.0  ;;  %v75_v25 = vld [vmem:[%s894_s1 + $0xc0] sm:$0xff]  ;;  %v720_v30 = vld [vmem:[%s893_s0 + $0xa8] sm:$0xff] }
  0x17   :  { %v101_v44 = vadd.f32 %v100_v38, %v99_v40  ;;  %v120_v18 = vsel %vm84_vm0, %v693_v17, 0.0  ;;  %v713_v27 = vld [vmem:[%s893_s0 + $0xa0] sm:$0xff]  ;;  %v126_v33 = vsel %vm84_vm0, %v720_v30, 0.0  ;;  %v733_v38 = vld [vmem:[%s893_s0 + $0xb0] sm:$0xff] }
  0x18   :  { %v124_v28 = vsel %vm84_vm0, %v713_v27, 0.0  ;;  %v128_v40 = vsel %vm84_vm0, %v733_v38, 0.0 }
  0x19   :  { %v103_v48 = vadd.f32 %v102_v41, %v101_v44  ;;  %v740_v41 = vld [vmem:[%s893_s0 + $0xb8] sm:$0xff]  ;;  %v80_v44 = vld [vmem:[%s894_s1 + $0xe8] sm:$0xff] }
  0x1a   :  { %225 = vperm.xlu1 %449, %v64_v34   ;;  %220 = vperm.xlu0 %448, %v63_v35   ;;  %v78_v34 = vld [vmem:[%s894_s1 + $0xd8] sm:$0xff]  ;;  %v77_v35 = vld [vmem:[%s894_s1 + $0xd0] sm:$0xff] }
  0x1b   :  { %v105_v52 = vadd.f32 %v104_v46, %v103_v48  ;;  %v79_v46 = vld [vmem:[%s894_s1 + $0xe0] sm:$0xff] }
  0x1d   :  { %v107_v56 = vadd.f32 %v106_v49, %v105_v52  ;;  %v753_v49 = vld [vmem:[%s893_s0 + $0xc0] sm:$0xff] }
  0x1e   :  { %235 = vperm.xlu1 %449, %v66_v42   ;;  %230 = vperm.xlu0 %448, %v65_v43   ;;  %v130_v43 = vsel %vm84_vm0, %v740_v41, 0.0 }
  0x1f   :  { %v109_v60 = vadd.f32 %v108_v54, %v107_v56  ;;  %v82_v56 = vld [vmem:[%s894_s1 + $0xf8] sm:$0xff] }
  0x21   :  { %v111_v0 = vadd.f32 %v110_v57, %v109_v60  ;;  %v81_v57 = vld [vmem:[%s894_s1 + $0xf0] sm:$0xff] }
  0x22   :  { %245 = vperm.xlu1 %449, %v68_v50   ;;  %240 = vperm.xlu0 %448, %v67_v51   ;;  %v132_v50 = vsel %vm84_vm0, %v753_v49, 0.0  ;;  %v760_v51 = vld [vmem:[%s893_s0 + $0xc8] sm:$0xff] }
  0x23   :  { %v113_v4 = vadd.f32 %v112_v62, %v111_v0  ;;  %v134_v54 = vsel %vm84_vm0, %v760_v51, 0.0  ;;  %v780_v62 = vld [vmem:[%s893_s0 + $0xd8] sm:$0xff] }
  0x25   :  { %v115_v8 = vadd.f32 %v114_v1, %v113_v4  ;;  %v138_v1 = vsel %vm84_vm0, %v780_v62, 0.0 }
  0x26   :  { %255 = vperm.xlu1 %449, %v70_v58   ;;  %250 = vperm.xlu0 %448, %v69_v59   ;;  %v773_v59 = vld [vmem:[%s893_s0 + $0xd0] sm:$0xff] }
  0x27   :  { %v117_v16 = vadd.f32 %v116_v6, %v115_v8  ;;  %v136_v60 = vsel %vm84_vm0, %v773_v59, 0.0  ;;  %v794_v6 = vld [vmem:[%s893_s0 + $0xe8] sm:$0xff] }
  0x29   :  { %v119_v20 = vadd.f32 %v118_v12, %v117_v16  ;;  %v142_v12 = vsel %vm84_vm0, %v794_v6, 0.0 }
  0x2a   :  { %265 = vperm.xlu1 %449, %v72_v2   ;;  %260 = vperm.xlu0 %448, %v71_v3   ;;  %v787_v3 = vld [vmem:[%s893_s0 + $0xe0] sm:$0xff] }
  0x2b   :  { %v121_v26 = vadd.f32 %v120_v18, %v119_v20  ;;  %v140_v4 = vsel %vm84_vm0, %v787_v3, 0.0  ;;  %v808_v18 = vld [vmem:[%s893_s0 + $0xf8] sm:$0xff] }
  0x2d   :  { %v123_v32 = vadd.f32 %v122_v22, %v121_v26  ;;  %v146_v22 = vsel %vm84_vm0, %v808_v18, 0.0 }
  0x2e   :  { %275 = vperm.xlu1 %449, %v74_v13   ;;  %270 = vperm.xlu0 %448, %v73_v14   ;;  %v801_v14 = vld [vmem:[%s893_s0 + $0xf0] sm:$0xff]  ;;  %s476_s0 = smov [#allocation4]  }
  0x2f   :  { %v125_v36 = vadd.f32 %v124_v28, %v123_v32  ;;  %v144_v16 = vsel %vm84_vm0, %v801_v14, 0.0  ;;  %v475_v28 = vmov 0.0   ;;  %s437_s24 = sshll.u32 %s476_s0, 4  ;;  %s438_s24 = int_to_ptr.vmem [resolvable:$true] %s437_s24 }
  0x30   :  { %17 = vst.msk [vmem:[#allocation2] sm:$0x1] %vm16_vm1, %v475_v28  ;;  %18 = vst.msk [vmem:[#allocation3] sm:$0x1] %vm16_vm1, %v475_v28  ;;  %s450_s25 = scalar_lea.vmem %s438_s24, 16  ;;  %s454_s26 = scalar_lea.vmem %s438_s24, 32 }
  0x31   :  { %v127_v42 = vadd.f32 %v126_v33, %v125_v36  ;;  %p451_p0 = scmp.ne.s32.totalorder %s438_s24, %s450_s25  ;;  %p455_p1 = scmp.lt.s32.totalorder %s438_s24, %s438_s24 }
  0x32   :  { %285 = vperm.xlu1 %449, %v76_v24   ;;  %280 = vperm.xlu0 %448, %v75_v25   ;;  %p456_p2 = scmp.lt.s32.totalorder %s454_s26, %s450_s25 }
  0x33   :  { %v129_v48 = vadd.f32 %v128_v40, %v127_v42 }
  0x34   :  { %p457_p3 = por %p456_p2, %p455_p1 }
  0x35   :  { %v131_v52 = vadd.f32 %v130_v43, %v129_v48 }
  0x36   :  { %295 = vperm.xlu1 %449, %v78_v34   ;;  %290 = vperm.xlu0 %448, %v77_v35   ;;  %p458_p4 = pnand %p457_p3, %p451_p0 }
  0x37   :  { %v133_v58 = vadd.f32 %v132_v50, %v131_v52  ;;  %v83_v36 = vld [vmem:[#allocation2] sm:$0x1] }
  0x39   :  { %v135_v0 = vadd.f32 %v134_v54, %v133_v58 }
  0x3a   :  { %305 = vperm.xlu1 %449, %v80_v44   ;;  %300 = vperm.xlu0 %448, %v79_v46  }
  0x3b   :  { %v137_v2 = vadd.f32 %v136_v60, %v135_v0 }
  0x3d   :  { %v139_v8 = vadd.f32 %v138_v1, %v137_v2 }
  0x3e   :  { %315 = vperm.xlu1 %449, %v82_v56   ;;  %310 = vperm.xlu0 %448, %v81_v57  }
  0x3f   :  { %v141_v13 = vadd.f32 %v140_v4, %v139_v8 }
  0x41   :  { %v143_v20 = vadd.f32 %v142_v12, %v141_v13 }
  0x43   :  { %v145_v24 = vadd.f32 %v144_v16, %v143_v20 }
  0x45   :  { %v147_v25 = vadd.f32 %v146_v22, %v145_v24 }
  0x47   :  { %v148_v26 = vrot.slane %v147_v25, 4 }
  0x49   :  { %v149_v32 = vadd.f32 %v148_v26, %v147_v25 }
  0x4b   :  { %v150_v33 = vrot.slane %v149_v32, 2 }
  0x4d   :  { %v151_v34 = vadd.f32 %v150_v33, %v149_v32 }
  0x4f   :  { %v152_v35 = vrot.slane %v151_v34, 1 }
  0x51   :  { %v153_v40 = vadd.f32 %v152_v35, %v151_v34 }
  0x53   :  { %v154_v42 = vadd.f32 %v153_v40, %v83_v36 }
  0x55   :  { %156 = vst.msk [vmem:[#allocation2] sm:$0x1] %vm16_vm1, %v154_v42 }
  0x81   :  { %v171_v43 = vpop.permute.xlu1 %170  ;;  %v161_v44 = vpop.permute.xlu0 %160 }
  0x82   :  { %v318_v46 = vmul.f32 %v161_v44, %v524_v10  ;;  %v320_v52 = vmul.f32 %v171_v43, %v519_v9 }
  0x84   :  { %v350_v56 = vsel %vm84_vm0, %v318_v46, 0.0  ;;  %v353_v2 = vsel %vm84_vm0, %v320_v52, 0.0 }
  0x85   :  { %v176_v48 = vpop.permute.xlu1 %175  ;;  %v166_v50 = vpop.permute.xlu0 %165 }
  0x86   :  { %v319_v54 = vmul.f32 %v166_v50, %v529_v11  ;;  %v321_v57 = vmul.f32 %v176_v48, %v540_v15 }
  0x88   :  { %v351_v58 = vsel %vm84_vm0, %v319_v54, 0.0  ;;  %v355_v8 = vsel %vm84_vm0, %v321_v57, 0.0 }
  0x89   :  { %v352_v60 = vadd.f32 %v351_v58, %v350_v56  ;;  %v186_v0 = vpop.permute.xlu1 %185  ;;  %v181_v1 = vpop.permute.xlu0 %180 }
  0x8a   :  { %v322_v4 = vmul.f32 %v181_v1, %v553_v21  ;;  %v323_v9 = vmul.f32 %v186_v0, %v560_v23 }
  0x8b   :  { %v354_v10 = vadd.f32 %v353_v2, %v352_v60 }
  0x8c   :  { %v357_v16 = vsel %vm84_vm0, %v322_v4, 0.0  ;;  %v359_v22 = vsel %vm84_vm0, %v323_v9, 0.0 }
  0x8d   :  { %v356_v12 = vadd.f32 %v355_v8, %v354_v10  ;;  %v196_v11 = vpop.permute.xlu1 %195  ;;  %v191_v13 = vpop.permute.xlu0 %190 }
  0x8e   :  { %v324_v15 = vmul.f32 %v191_v13, %v573_v29  ;;  %v325_v24 = vmul.f32 %v196_v11, %v580_v31 }
  0x8f   :  { %v358_v20 = vadd.f32 %v357_v16, %v356_v12 }
  0x90   :  { %v361_v28 = vsel %vm84_vm0, %v324_v15, 0.0  ;;  %v363_v33 = vsel %vm84_vm0, %v325_v24, 0.0 }
  0x91   :  { %v360_v25 = vadd.f32 %v359_v22, %v358_v20  ;;  %v206_v26 = vpop.permute.xlu1 %205  ;;  %v201_v21 = vpop.permute.xlu0 %200 }
  0x92   :  { %v326_v32 = vmul.f32 %v201_v21, %v593_v37  ;;  %v327_v34 = vmul.f32 %v206_v26, %v600_v39 }
  0x93   :  { %v362_v23 = vadd.f32 %v361_v28, %v360_v25 }
  0x94   :  { %v365_v40 = vsel %vm84_vm0, %v326_v32, 0.0  ;;  %v367_v43 = vsel %vm84_vm0, %v327_v34, 0.0 }
  0x95   :  { %v364_v35 = vadd.f32 %v363_v33, %v362_v23  ;;  %v216_v36 = vpop.permute.xlu1 %215  ;;  %v211_v29 = vpop.permute.xlu0 %210 }
  0x96   :  { %v328_v42 = vmul.f32 %v211_v29, %v613_v45  ;;  %v329_v44 = vmul.f32 %v216_v36, %v620_v47 }
  0x97   :  { %v366_v31 = vadd.f32 %v365_v40, %v364_v35 }
  0x98   :  { %v369_v50 = vsel %vm84_vm0, %v328_v42, 0.0  ;;  %v371_v54 = vsel %vm84_vm0, %v329_v44, 0.0 }
  0x99   :  { %v368_v46 = vadd.f32 %v367_v43, %v366_v31  ;;  %v226_v48 = vpop.permute.xlu1 %225  ;;  %v221_v37 = vpop.permute.xlu0 %220 }
  0x9a   :  { %v330_v52 = vmul.f32 %v221_v37, %v633_v53  ;;  %v331_v56 = vmul.f32 %v226_v48, %v640_v55 }
  0x9b   :  { %v370_v39 = vadd.f32 %v369_v50, %v368_v46 }
  0x9c   :  { %v373_v60 = vsel %vm84_vm0, %v330_v52, 0.0  ;;  %v375_v1 = vsel %vm84_vm0, %v331_v56, 0.0 }
  0x9d   :  { %v372_v57 = vadd.f32 %v371_v54, %v370_v39  ;;  %v236_v58 = vpop.permute.xlu1 %235  ;;  %v231_v45 = vpop.permute.xlu0 %230 }
  0x9e   :  { %v332_v0 = vmul.f32 %v231_v45, %v653_v61  ;;  %v333_v2 = vmul.f32 %v236_v58, %v660_v63 }
  0x9f   :  { %v374_v47 = vadd.f32 %v373_v60, %v372_v57 }
  0xa0   :  { %v377_v8 = vsel %vm84_vm0, %v332_v0, 0.0  ;;  %v379_v12 = vsel %vm84_vm0, %v333_v2, 0.0 }
  0xa1   :  { %v376_v4 = vadd.f32 %v375_v1, %v374_v47  ;;  %v246_v10 = vpop.permute.xlu1 %245  ;;  %v241_v53 = vpop.permute.xlu0 %240 }
  0xa2   :  { %v334_v9 = vmul.f32 %v241_v53, %v673_v5  ;;  %v335_v11 = vmul.f32 %v246_v10, %v680_v7 }
  0xa3   :  { %v378_v55 = vadd.f32 %v377_v8, %v376_v4 }
  0xa4   :  { %v381_v15 = vsel %vm84_vm0, %v334_v9, 0.0  ;;  %v383_v22 = vsel %vm84_vm0, %v335_v11, 0.0 }
  0xa5   :  { %v380_v13 = vadd.f32 %v379_v12, %v378_v55  ;;  %v256_v16 = vpop.permute.xlu1 %255  ;;  %v251_v61 = vpop.permute.xlu0 %250 }
  0xa6   :  { %v336_v20 = vmul.f32 %v251_v61, %v693_v17  ;;  %v337_v24 = vmul.f32 %v256_v16, %v700_v19 }
  0xa7   :  { %v382_v63 = vadd.f32 %v381_v15, %v380_v13 }
  0xa8   :  { %v385_v21 = vsel %vm84_vm0, %v336_v20, 0.0  ;;  %v387_v32 = vsel %vm84_vm0, %v337_v24, 0.0  ;;  %v157_v20 = vld [vmem:[#allocation3] sm:$0x1] }
  0xa9   :  { %v384_v25 = vadd.f32 %v383_v22, %v382_v63  ;;  %v266_v26 = vpop.permute.xlu1 %265  ;;  %v261_v5 = vpop.permute.xlu0 %260  ;;  %v426_v22 = vld [vmem:[#allocation2] sm:$0x1] }
  0xaa   :  { %v338_v28 = vmul.f32 %v261_v5, %v713_v27  ;;  %v339_v23 = vmul.f32 %v266_v26, %v720_v30 }
  0xab   :  { %v386_v7 = vadd.f32 %v385_v21, %v384_v25 }
  0xac   :  { %v389_v35 = vsel %vm84_vm0, %v338_v28, 0.0  ;;  %v391_v29 = vsel %vm84_vm0, %v339_v23, 0.0 }
  0xad   :  { %v388_v33 = vadd.f32 %v387_v32, %v386_v7  ;;  %v276_v34 = vpop.permute.xlu1 %275  ;;  %v271_v17 = vpop.permute.xlu0 %270 }
  0xae   :  { %v340_v36 = vmul.f32 %v271_v17, %v733_v38  ;;  %v341_v40 = vmul.f32 %v276_v34, %v740_v41 }
  0xaf   :  { %v390_v19 = vadd.f32 %v389_v35, %v388_v33 }
  0xb0   :  { %v393_v43 = vsel %vm84_vm0, %v340_v36, 0.0  ;;  %v395_v46 = vsel %vm84_vm0, %v341_v40, 0.0 }
  0xb1   :  { %v392_v42 = vadd.f32 %v391_v29, %v390_v19  ;;  %v286_v31 = vpop.permute.xlu1 %285  ;;  %v281_v27 = vpop.permute.xlu0 %280 }
  0xb2   :  { %v342_v44 = vmul.f32 %v281_v27, %v753_v49  ;;  %v343_v48 = vmul.f32 %v286_v31, %v760_v51 }
  0xb3   :  { %v394_v30 = vadd.f32 %v393_v43, %v392_v42 }
  0xb4   :  { %v397_v52 = vsel %vm84_vm0, %v342_v44, 0.0  ;;  %v399_v54 = vsel %vm84_vm0, %v343_v48, 0.0 }
  0xb5   :  { %v396_v37 = vadd.f32 %v395_v46, %v394_v30  ;;  %v296_v50 = vpop.permute.xlu1 %295  ;;  %v291_v38 = vpop.permute.xlu0 %290 }
  0xb6   :  { %v344_v39 = vmul.f32 %v291_v38, %v773_v59  ;;  %v345_v56 = vmul.f32 %v296_v50, %v780_v62 }
  0xb7   :  { %v398_v41 = vadd.f32 %v397_v52, %v396_v37 }
  0xb8   :  { %v401_v45 = vsel %vm84_vm0, %v344_v39, 0.0  ;;  %v403_v0 = vsel %vm84_vm0, %v345_v56, 0.0 }
  0xb9   :  { %v400_v57 = vadd.f32 %v399_v54, %v398_v41  ;;  %v306_v58 = vpop.permute.xlu1 %305  ;;  %v301_v49 = vpop.permute.xlu0 %300 }
  0xba   :  { %v346_v60 = vmul.f32 %v301_v49, %v787_v3  ;;  %v347_v47 = vmul.f32 %v306_v58, %v794_v6 }
  0xbb   :  { %v402_v51 = vadd.f32 %v401_v45, %v400_v57 }
  0xbc   :  { %v405_v4 = vsel %vm84_vm0, %v346_v60, 0.0  ;;  %v407_v53 = vsel %vm84_vm0, %v347_v47, 0.0 }
  0xbd   :  { %v404_v1 = vadd.f32 %v403_v0, %v402_v51  ;;  %v316_v2 = vpop.permute.xlu1 %315  ;;  %v311_v59 = vpop.permute.xlu0 %310 }
  0xbe   :  { %v348_v10 = vmul.f32 %v311_v59, %v801_v14  ;;  %v349_v8 = vmul.f32 %v316_v2, %v808_v18 }
  0xbf   :  { %v406_v62 = vadd.f32 %v405_v4, %v404_v1 }
  0xc0   :  { %v409_v3 = vsel %vm84_vm0, %v348_v10, 0.0  ;;  %v411_v12 = vsel %vm84_vm0, %v349_v8, 0.0 }
  0xc1   :  { %v408_v9 = vadd.f32 %v407_v53, %v406_v62 }
  0xc3   :  { %v410_v55 = vadd.f32 %v409_v3, %v408_v9 }
  0xc5   :  { %v412_v11 = vadd.f32 %v411_v12, %v410_v55 }
  0xc7   :  { %v413_v6 = vrot.slane %v412_v11, 4 }
  0xc9   :  { %v414_v13 = vadd.f32 %v413_v6, %v412_v11 }
  0xcb   :  { %v415_v16 = vrot.slane %v414_v13, 2 }
  0xcd   :  { %v416_v61 = vadd.f32 %v415_v16, %v414_v13 }
  0xcf   :  { %v417_v15 = vrot.slane %v416_v61, 1 }
  0xd1   :  { %v418_v63 = vadd.f32 %v417_v15, %v416_v61 }
  0xd3   :  { %v419_v14 = vadd.f32 %v418_v63, %v157_v20 }
  0xd5   :  { %420 = vst.msk [vmem:[#allocation3] sm:$0x1] %vm16_vm1, %v419_v14 }
  0xdc   :  { %v424_v24 = vld [vmem:[#allocation3] sm:$0x1] }
  0xdd   :  { %v427_v18 = vsub.f32 %v426_v22, %v424_v24  ;;  %v425_v25 = vmul.f32 0.0078125, %v424_v24 }
  0xdf   :  { %v428_v26 = vmul.f32 0.0078125, %v427_v18 }
  0xe1   :  { %v429_v5 = vsub.f32 %v425_v25, %v428_v26 }
  0xe3   :  { %430 = vst.msk [vmem:[#allocation4] sm:$0x1] %vm16_vm1, %v429_v5 }
  0xe4   :  { %461 = shalt.err (!%p458_p4)
}
  0xe5   :  { %s462_s29 = scalar_lea.hbm %s895_s2, 16 }
  0xe6   :  { %p463_p5 = scmp.ne.s32.totalorder %s895_s2, %s462_s29  ;;  %p466_p6 = scmp.lt.u32.totalorder %s462_s29, %s895_s2 }
  0xe8   :  { %p468_p7 = pnand %p466_p6, %p463_p5 }
  0xea   :  { %471 = shalt.err (!%p468_p7)
}
  0xeb   :  { %440 = dma.vmem_to_hbm [thread:$0]  %s438_s24, 16, %s895_s2, [#allocation5]  }
  0xec   :  { %472 = dma.done.wait [#allocation5], 16  }
  0xed   :  { %473 = vsyncadd [#allocation5], 4294967280 }
  0xee   :  { %444 = vsyncpa [#allocation5], 1 }

</bundles_post_ra>
